<compile_context>
chip_gen: v5e
topology: v5e:2x2
jax: 0.10.0
libtpu: 0.0.40
codegen_flags: <defaults>
</compile_context>

<pallas_src>
import functools

import jax
import jax.numpy as jnp
from jax.experimental import pallas as pl
from jax.experimental.pallas import tpu as pltpu


def _round_up(v, m):
    return ((v + m - 1) // m) * m


def _round_down8(v):
    return max(8, (v // 8) * 8)


# ---------------------------------------------------------------------------
# Kernels
# ---------------------------------------------------------------------------
def _rope_roll_kernel(x_ref, cos_ref, sin_p_ref, sin_m_ref, o_ref, *,
                      shift_p, shift_m):
    """Lane-dense RoPE on one (seq-tile, group-tile) block.

    x_ref:     (ts, tg, L)  activations; L is a multiple of 128 and packs
                            L // head_dim whole heads along lanes.
    cos_ref:   (ts, L)      per-lane cos coefficients (1.0 on pass-through lanes)
    sin_p_ref: (ts, L)      coefficient of roll(x, +d/2)  (upper-half lanes)
    sin_m_ref: (ts, L)      coefficient of roll(x, -d/2)  (lower-half lanes, negated)
    o_ref:     (ts, tg, L)

    out = x*cos + roll(x,+d2)*sin_p + roll(x,-d2)*sin_m  — one full-width
    unmasked store; the two rolls land on the XLU slot.  The roll sources are
    only used at lanes whose partner lies within the same packed head, so head
    boundaries are never crossed (coefficients are exactly zero elsewhere).
    """
    x = x_ref[...]
    c = cos_ref[...][:, None, :]          # broadcast over the packed-head axis
    sp = sin_p_ref[...][:, None, :]
    sm = sin_m_ref[...][:, None, :]
    out = (x * c
           + pltpu.roll(x, shift=shift_p, axis=2) * sp
           + pltpu.roll(x, shift=shift_m, axis=2) * sm)
    o_ref[...] = out.astype(o_ref.dtype)


def _rope_split_kernel(x_ref, cos_ref, sin_ref, o_ref, *, d):
    """Fallback split-half RoPE for head_dims that cannot be folded into a
    128-lane layout (two half-width stores + pass-through copy)."""
    d2 = d // 2
    x1 = x_ref[..., :d2]
    x2 = x_ref[..., d2:d]
    c = cos_ref[...][:, None, :]
    s = sin_ref[...][:, None, :]
    o_ref[..., :d2] = (x1 * c - x2 * s).astype(o_ref.dtype)
    o_ref[..., d2:d] = (x2 * c + x1 * s).astype(o_ref.dtype)
    if d < x_ref.shape[-1]:
        o_ref[..., d:] = x_ref[..., d:]


# ---------------------------------------------------------------------------
# Tiling / budgets
# ---------------------------------------------------------------------------
def _vmem_budgets(user_block_budget):
    """Per-generation scoped-VMEM limit and per-block byte budget."""
    vmem_cap = 64 * 1024 * 1024            # conservative fallback (v7x-sized)
    try:
        vmem_cap = int(getattr(pltpu.get_tpu_info(), "vmem_capacity_bytes",
                               vmem_cap))
    except Exception:
        pass
    # v5e/v6e (128 MiB physical): 64 MiB scoped limit; v7x (64 MiB): 48 MiB.
    vmem_limit = min(64 * 1024 * 1024, (3 * vmem_cap) // 4)
    # x + out blocks, each double-buffered (~4x one block) + tiny cos/sin.
    block_budget = max(512 * 1024, min(16 * 1024 * 1024, vmem_limit // 6))
    if user_block_budget is not None:
        block_budget = int(user_block_budget)
    return block_budget, vmem_limit


def _pick_tiles(S, G, L, itemsize, budget, min_steps=4):
    """Largest (ts, tg) whose padded x/out block stays under `budget`, keeping
    (8, 128) alignment, and (for v7x megacore) at least `min_steps` grid steps
    when the tensor is large enough."""
    Lp = _round_up(L, 128)
    row_bytes = _round_up(G, 8) * Lp * itemsize
    if row_bytes <= budget:
        tg = G
        ts = min(S, max(1, budget // row_bytes))
        if ts < S:
            ts = min(S, _round_down8(ts))
    else:
        ts = min(S, 8)
        tg = min(G, _round_down8(budget // (ts * Lp * itemsize)))

    def nsteps(ts_, tg_):
        return pl.cdiv(S, ts_) * pl.cdiv(G, tg_)

    # v7x has two TensorCores: never leave a large tensor as a 1-step grid.
    while nsteps(ts, tg) < min_steps:
        if ts > 8:
            ts = _round_down8((ts + 1) // 2)
        elif tg > 8:
            tg = _round_down8((tg + 1) // 2)
        else:
            break
    return ts, tg


# ---------------------------------------------------------------------------
# Wrapper
# ---------------------------------------------------------------------------
def rotary_positional_embeddings(x, d, base=10000, block_budget_bytes=None):
    """Apply RoPE to x of shape [seq, batch, heads, head_dim]."""
    S, B, H, D = x.shape
    assert d % 2 == 0 and 0 < d <= D
    d2 = d // 2
    BH = B * H

    budget, vmem_limit = _vmem_budgets(block_budget_bytes)

    # --- cos/sin cache: always f32 (angle precision), cast once at the store.
    theta = 1.0 / (base ** (jnp.arange(0, d, 2, dtype=jnp.float32) / d))   # (d/2,)
    angles = jnp.arange(S, dtype=jnp.float32)[:, None] * theta[None, :]    # (S, d/2)
    cos_h = jnp.cos(angles)
    sin_h = jnp.sin(angles)

    # --- choose layout --------------------------------------------------------
    if D % 128 == 0:
        lane_roll, L, G = True, D, BH                   # already lane-dense
    elif 128 % D == 0 and (BH * D) % 128 == 0:
        lane_roll, L, G = True, 128, (BH * D) // 128    # fold heads into lanes
    else:
        lane_roll, L, G = False, D, BH                  # fallback (masked stores)

    x_flat = x.reshape(S, G, L)
    ts, tg = _pick_tiles(S, G, L, x.dtype.itemsize, budget)
    grid = (pl.cdiv(S, ts), pl.cdiv(G, tg))

    x_spec = pl.BlockSpec((ts, tg, L), lambda i, j: (i, j, 0))

    def cache_spec(width):
        # Cache block ignores the inner (G) grid axis, so it is only
        # re-fetched when the seq tile changes.
        return pl.BlockSpec((ts, width), lambda i, j: (i, 0))

    if lane_roll:
        # Per-head lane pattern of width D, tiled across the packed heads.
        pad0 = jnp.zeros((S, D - d), jnp.float32)
        pad1 = jnp.ones((S, D - d), jnp.float32)
        zh = jnp.zeros((S, d2), jnp.float32)
        reps = L // D
        cos_lane = jnp.tile(jnp.concatenate([cos_h, cos_h, pad1], axis=1), (1, reps))
        sin_p = jnp.tile(jnp.concatenate([zh, sin_h, pad0], axis=1), (1, reps))
        sin_m = jnp.tile(jnp.concatenate([-sin_h, zh, pad0], axis=1), (1, reps))
        kernel = functools.partial(_rope_roll_kernel, shift_p=d2, shift_m=L - d2)
        operands = (x_flat, cos_lane, sin_p, sin_m)
        in_specs = [x_spec, cache_spec(L), cache_spec(L), cache_spec(L)]
    else:
        kernel = functools.partial(_rope_split_kernel, d=d)
        operands = (x_flat, cos_h, sin_h)
        in_specs = [x_spec, cache_spec(d2), cache_spec(d2)]

    out_flat = pl.pallas_call(
        kernel,
        out_shape=jax.ShapeDtypeStruct((S, G, L), x.dtype),
        grid_spec=pltpu.PrefetchScalarGridSpec(
            num_scalar_prefetch=0,
            grid=grid,
            in_specs=in_specs,
            out_specs=x_spec,
        ),
        input_output_aliases={0: 0},     # pure streaming: output aliases x
        compiler_params=pltpu.CompilerParams(
            dimension_semantics=("parallel", "parallel"),
            vmem_limit_bytes=vmem_limit,
        ),
    )(*operands)

    # TODO(synk): for production, fuse this rotation into the adjacent QK
    # projection / attention kernel to avoid the standalone HBM round-trip.
    return out_flat.reshape(S, B, H, D)


# ---------------------------------------------------------------------------
# Pure-JAX reference (mirrors the PyTorch module's forward)
# ---------------------------------------------------------------------------
def _rope_reference(x, d, base=10000):
    S = x.shape[0]
    theta = 1.0 / (base ** (jnp.arange(0, d, 2, dtype=jnp.float32) / d))
    seq_idx = jnp.arange(S, dtype=jnp.float32)
    idx_theta = jnp.einsum("n,d->nd", seq_idx, theta)
    idx_theta2 = jnp.concatenate([idx_theta, idx_theta], axis=1)
    cos_cached = jnp.cos(idx_theta2)[:, None, None, :]
    sin_cached = jnp.sin(idx_theta2)[:, None, None, :]

    x_rope, x_pass = x[..., :d], x[..., d:]
    d2 = d // 2
    neg_half = jnp.concatenate([-x_rope[..., d2:], x_rope[..., :d2]], axis=-1)
    x_rope = x_rope * cos_cached + neg_half * sin_cached
    return jnp.concatenate([x_rope, x_pass], axis=-1)


if __name__ == "__main__":
    key = jax.random.PRNGKey(0)

    # Test 1: packed-lane path (head_dim=32 folded 4x into 128 lanes) with a
    # partial rotation d < head_dim (exercises the pass-through lanes).
    seq, batch, heads, head_dim = 8, 2, 4, 32
    d_rot = 16
    x = jax.random.normal(key, (seq, batch, heads, head_dim), dtype=jnp.float32)
    rope1 = jax.jit(functools.partial(rotary_positional_embeddings, d=d_rot))
    out = jax.block_until_ready(rope1(x))
    ref = _rope_reference(x, d_rot)
    assert out.shape == x.shape
    assert jnp.allclose(out, ref, atol=1e-5, rtol=1e-5), "mismatch vs reference (test 1)"

    # Test 2: multi-tile grid (tiny block budget forces seq tiling), full rotation.
    key2 = jax.random.PRNGKey(1)
    seq2, batch2, heads2, head_dim2 = 48, 2, 4, 32
    d_rot2 = 32
    x2 = jax.random.normal(key2, (seq2, batch2, heads2, head_dim2), dtype=jnp.float32)
    rope2 = jax.jit(functools.partial(rotary_positional_embeddings, d=d_rot2,
                                      block_budget_bytes=16 * 1024))
    out2 = jax.block_until_ready(rope2(x2))
    ref2 = _rope_reference(x2, d_rot2)
    assert out2.shape == x2.shape
    assert jnp.allclose(out2, ref2, atol=1e-5, rtol=1e-5), "mismatch vs reference (test 2)"

    print("KERNEL_OK")
</pallas_src>

<mosaic_0001>
module attributes {stable_mosaic.version = 11 : i64} {
  func.func @_rope_roll_kernel(%arg0: i32, %arg1: i32, %arg2: memref<8x2x128xf32, #tpu.memory_space<vmem>>, %arg3: memref<8x128xf32, #tpu.memory_space<vmem>>, %arg4: memref<8x128xf32, #tpu.memory_space<vmem>>, %arg5: memref<8x128xf32, #tpu.memory_space<vmem>>, %arg6: memref<8x2x128xf32, #tpu.memory_space<vmem>>) attributes {dimension_semantics = [#tpu.dimension_semantics<parallel>, #tpu.dimension_semantics<parallel>], iteration_bounds = array<i64: 1, 1>, scalar_prefetch = 0 : i64, scratch_operands = 0 : i64, tpu.core_type = #tpu.core_type<tc>, window_params = [{transform_indices = @transform_0, window_bounds = array<i64: 8, 2, 128>}, {transform_indices = @transform_1, window_bounds = array<i64: 8, 128>}, {transform_indices = @transform_2, window_bounds = array<i64: 8, 128>}, {transform_indices = @transform_3, window_bounds = array<i64: 8, 128>}, {transform_indices = @transform_4, window_bounds = array<i64: 8, 2, 128>}]} {
    %c0 = arith.constant 0 : index
    %c0_0 = arith.constant 0 : index
    %c0_1 = arith.constant 0 : index
    %0 = vector.load %arg2[%c0, %c0_0, %c0_1] : memref<8x2x128xf32, #tpu.memory_space<vmem>>, vector<8x2x128xf32>
    %c0_2 = arith.constant 0 : index
    %c0_3 = arith.constant 0 : index
    %1 = vector.load %arg3[%c0_2, %c0_3] : memref<8x128xf32, #tpu.memory_space<vmem>>, vector<8x128xf32>
    %2 = vector.shape_cast %1 : vector<8x128xf32> to vector<8x1x128xf32>
    %c0_4 = arith.constant 0 : index
    %c0_5 = arith.constant 0 : index
    %3 = vector.load %arg4[%c0_4, %c0_5] : memref<8x128xf32, #tpu.memory_space<vmem>>, vector<8x128xf32>
    %4 = vector.shape_cast %3 : vector<8x128xf32> to vector<8x1x128xf32>
    %c0_6 = arith.constant 0 : index
    %c0_7 = arith.constant 0 : index
    %5 = vector.load %arg5[%c0_6, %c0_7] : memref<8x128xf32, #tpu.memory_space<vmem>>, vector<8x128xf32>
    %6 = vector.shape_cast %5 : vector<8x128xf32> to vector<8x1x128xf32>
    %7 = vector.broadcast %2 : vector<8x1x128xf32> to vector<8x2x128xf32>
    %8 = arith.mulf %0, %7 : vector<8x2x128xf32>
    %c8_i32 = arith.constant 8 : i32
    %9 = tpu.dynamic_rotate %0 by %c8_i32 dim 2 : vector<8x2x128xf32>, i32 -> vector<8x2x128xf32>
    %10 = vector.broadcast %4 : vector<8x1x128xf32> to vector<8x2x128xf32>
    %11 = arith.mulf %9, %10 : vector<8x2x128xf32>
    %12 = arith.addf %8, %11 : vector<8x2x128xf32>
    %c120_i32 = arith.constant 120 : i32
    %13 = tpu.dynamic_rotate %0 by %c120_i32 dim 2 : vector<8x2x128xf32>, i32 -> vector<8x2x128xf32>
    %14 = vector.broadcast %6 : vector<8x1x128xf32> to vector<8x2x128xf32>
    %15 = arith.mulf %13, %14 : vector<8x2x128xf32>
    %16 = arith.addf %12, %15 : vector<8x2x128xf32>
    %c0_8 = arith.constant 0 : index
    %c0_9 = arith.constant 0 : index
    %c0_10 = arith.constant 0 : index
    %17 = vector.load %arg6[%c0_8, %c0_9, %c0_10] : memref<8x2x128xf32, #tpu.memory_space<vmem>>, vector<8x2x128xf32>
    tpu.vector_store %arg6[%c0_8, %c0_9, %c0_10], %16 {strides = array<i32>} : memref<8x2x128xf32, #tpu.memory_space<vmem>>, vector<8x2x128xf32>,
    return
  }
  func.func @transform_0(%arg0: i32, %arg1: i32) -> (i32, i32, i32) {
    %c0_i32 = arith.constant 0 : i32
    %c0_i32_0 = arith.constant 0 : i32
    return %arg0, %arg1, %c0_i32 : i32, i32, i32
  }
  func.func @transform_1(%arg0: i32, %arg1: i32) -> (i32, i32) {
    %c0_i32 = arith.constant 0 : i32
    %c0_i32_0 = arith.constant 0 : i32
    return %arg0, %c0_i32 : i32, i32
  }
  func.func @transform_2(%arg0: i32, %arg1: i32) -> (i32, i32) {
    %c0_i32 = arith.constant 0 : i32
    %c0_i32_0 = arith.constant 0 : i32
    return %arg0, %c0_i32 : i32, i32
  }
  func.func @transform_3(%arg0: i32, %arg1: i32) -> (i32, i32) {
    %c0_i32 = arith.constant 0 : i32
    %c0_i32_0 = arith.constant 0 : i32
    return %arg0, %c0_i32 : i32, i32
  }
  func.func @transform_4(%arg0: i32, %arg1: i32) -> (i32, i32, i32) {
    %c0_i32 = arith.constant 0 : i32
    %c0_i32_0 = arith.constant 0 : i32
    return %arg0, %arg1, %c0_i32 : i32, i32, i32
  }
}

</mosaic_0001>

<bundles_post_ra>
// kernel: tile.19
= control target key start
LH: loop header
LB: loop body
LE: loop exit
PB: predicated region body
PF: predicated region fallthrough
CT: control target
= control target key end

     0   :  { %vm36_vm0 = vcmask 1047556   ;;  %s81_s22 = smov 32   ;;  %s82_s23 = smov 64   ;;  %vm38_vm1 = vcmask 261120   ;;  %vm48_vm2 = vcmask 1048320   ;;  %vm58_vm3 = vcmask 785920   ;;  %s133_s0 = inlined_call_operand.vmem [shape: f32[8,4,32], index: 0, kind: input, shape index: {}]   ;;  %s134_s1 = inlined_call_operand.vmem [shape: f32[8,128], index: 1, kind: output, shape index: {}]  }
   0x1   :  { %v70_v0 = vld [vmem:[%s133_s0 + $0x1c] sm:$0xf]  ;;  %v71_v1 = vld [vmem:[%s133_s0 + $0x18] sm:$0xf]  ;;  %v72_v2 = vld [vmem:[%s133_s0 + $0x14] sm:$0xf] }
   0x2   :  { %7 = vst [vmem:[#allocation0 + $0x38] sm:$0xf] %v70_v0  ;;  %v73_v3 = vld [vmem:[%s133_s0 + $0x10] sm:$0xf]  ;;  %v74_v4 = vld [vmem:[%s133_s0 + $0xc] sm:$0xf] }
   0x3   :  { %11 = vst [vmem:[#allocation0 + $0x30] sm:$0xf] %v71_v1  ;;  %v75_v5 = vld [vmem:[%s133_s0 + $0x8] sm:$0xf]  ;;  %v76_v6 = vld [vmem:[%s133_s0 + $0x4] sm:$0xf] }
   0x4   :  { %15 = vst [vmem:[#allocation0 + $0x28] sm:$0xf] %v72_v2  ;;  %v32_v7 = vld [vmem:[%s133_s0] sm:$0xf]  ;;  %s80_s0 = smov 96   ;;  %vm68_vm4 = vcmask 523520  }
   0x5   :  { %19 = vst [vmem:[#allocation0 + $0x20] sm:$0xf] %v73_v3 }
   0x6   :  { %23 = vst [vmem:[#allocation0 + $0x18] sm:$0xf] %v74_v4 }
   0x7   :  { %27 = vst [vmem:[#allocation0 + $0x10] sm:$0xf] %v75_v5 }
   0x8   :  { %31 = vst [vmem:[#allocation0 + $0x8] sm:$0xf] %v76_v6 }
   0x9   :  { %33 = vst [vmem:[#allocation0] sm:$0xf] %v32_v7 }
   0xc   :  { %v43_v8 = vld [vmem:[#allocation0 + $0x3] ss:$8 sm:$0xf0]   ;;  %v63_v9 = vld [vmem:[#allocation0 + $0x1] ss:$8 sm:$0xf0]  }
   0xd   :  { %v53_v15 = vld [vmem:[#allocation0 + $0x2] ss:$8 sm:$0xf0]   ;;  %v35_v18 = vld [vmem:[#allocation0] ss:$8 sm:$0xf0]  }
  0x10   :  { %v41_v10 = vld [vmem:[#allocation0 + $0x3] ss:$8 sm:$0xf]   ;;  %v61_v12 = vld [vmem:[#allocation0 + $0x1] ss:$8 sm:$0xf]  }
  0x11   :  { %v45_v11 = vsel %vm36_vm0, %v43_v8, %v41_v10  ;;  %v65_v13 = vsel %vm36_vm0, %v63_v9, %v61_v12  ;;  %v51_v14 = vld [vmem:[#allocation0 + $0x2] ss:$8 sm:$0xf]   ;;  %v34_v17 = vld [vmem:[#allocation0] ss:$8 sm:$0xf]  }
  0x12   :  { %46 = vrot.lane.b32.xlu0 %v45_v11, %s80_s0  ;;  %66 = vrot.lane.b32.xlu1 %v65_v13, %s81_s22  ;;  %v55_v16 = vsel %vm36_vm0, %v53_v15, %v51_v14  ;;  %v37_v19 = vsel %vm36_vm0, %v35_v18, %v34_v17 }
  0x13   :  { %39 = vst.msk [vmem:[%s134_s1] sm:$0xff] %vm38_vm1, %v37_v19  }
  0x1a   :  { %56 = vrot.lane.b32.xlu0 %v55_v16, %s82_s23 }
  0x84   :  { %v47_v20 = vpop.permute.xlu0 %46   ;;  %v67_v21 = vpop.permute.xlu1 %66  }
  0x85   :  { %49 = vst.msk [vmem:[%s134_s1] sm:$0xff] %vm48_vm2, %v47_v20  }
  0x8c   :  { %v57_v22 = vpop.permute.xlu0 %56  }
  0x8d   :  { %59 = vst.msk [vmem:[%s134_s1] sm:$0xff] %vm58_vm3, %v57_v22  }
  0x8e   :  { %69 = vst.msk [vmem:[%s134_s1] sm:$0xff] %vm68_vm4, %v67_v21  }

// kernel: rotary_positional_embeddings.1
= control target key start
LH: loop header
LB: loop body
LE: loop exit
PB: predicated region body
PF: predicated region fallthrough
CT: control target
= control target key end

     0   :  { %s186_s19 = smov 8   ;;  %s187_s6 = smov 120   ;;  %s331_s0 = inlined_call_operand.vmem [shape: f32[8,2,128], index: 0, kind: input, shape index: {}, may-alias: {0,4}]   ;;  %s332_s1 = inlined_call_operand.vmem [shape: f32[8,128], index: 1, kind: input, shape index: {}]   ;;  %s333_s2 = inlined_call_operand.vmem [shape: f32[8,128], index: 2, kind: input, shape index: {}]   ;;  %s334_s3 = inlined_call_operand.vmem [shape: f32[8,128], index: 3, kind: input, shape index: {}]   ;;  %s335_s4 = inlined_call_operand.vmem [shape: f32[8,2,128], index: 4, kind: output, shape index: {}, may-alias: {0,4}]  }
   0x1   :  { %v216_v0 = vld [vmem:[%s331_s0 + $0x4] sm:$0x3]  ;;  %v17_v1 = vld [vmem:[%s331_s0] sm:$0x3]  ;;  %v225_v2 = vld [vmem:[%s331_s0 + $0x8] sm:$0x3] }
   0x2   :  { %80 = vrot.lane.b32.xlu1 %v216_v0, %s186_s19  ;;  %76 = vrot.lane.b32.xlu0 %v17_v1, %s186_s19  ;;  %v20_v3 = vld [vmem:[%s331_s0 + $0x6] sm:$0x3]  ;;  %v234_v4 = vld [vmem:[%s331_s0 + $0x2] sm:$0x3] }
   0x3   :  { %84 = vrot.lane.b32.xlu2 %v225_v2, %s186_s19  ;;  %v239_v5 = vld [vmem:[%s331_s0 + $0xa] sm:$0x3]  ;;  %v246_v6 = vld [vmem:[%s331_s0 + $0xe] sm:$0x3]  ;;  %v23_v7 = vld [vmem:[%s331_s0 + $0xc] sm:$0x3] }
   0x4   :  { %v264_v10 = vld [vmem:[%s332_s1] sm:$0xff] }
   0x5   :  { %v269_v11 = vld [vmem:[%s333_s2] sm:$0xff]  ;;  %v52_v14 = vperm.slane %v264_v10, 0  ;;  %v29_v18 = vrot.slane %v264_v10, 3  ;;  %v32_v32 = vrot.slane %v264_v10, 6  ;;  %v28_v41 = vrot.slane %v264_v10, 2 }
   0x6   :  { %v274_v12 = vld [vmem:[%s334_s3] sm:$0xff]  ;;  %v92_v15 = vperm.slane %v269_v11, 0  ;;  %v38_v23 = vrot.slane %v269_v11, 3  ;;  %v41_v37 = vrot.slane %v269_v11, 6  ;;  %v37_v42 = vrot.slane %v269_v11, 2 }
   0x7   :  { %v140_v16 = vperm.slane %v274_v12, 0  ;;  %v68_v17 = vmul.f32 %v52_v14, %v17_v1  ;;  %v47_v24 = vrot.slane %v274_v12, 3  ;;  %v55_v26 = vperm.slane %v29_v18, 0 }
   0x8   :  { %v95_v29 = vperm.slane %v38_v23, 0  ;;  %v50_v38 = vrot.slane %v274_v12, 6  ;;  %v58_v40 = vperm.slane %v32_v32, 0  ;;  %v27_v43 = vrot.slane %v264_v10, 1 }
   0x9   :  { %v143_v30 = vperm.slane %v47_v24, 0  ;;  %v71_v31 = vmul.f32 %v55_v26, %v20_v3  ;;  %v36_v44 = vrot.slane %v269_v11, 1  ;;  %v98_v46 = vperm.slane %v41_v37, 0 }
   0xa   :  { %82 = vrot.lane.b32.xlu1 %v20_v3, %s186_s19  ;;  %78 = vrot.lane.b32.xlu0 %v234_v4, %s186_s19  ;;  %v146_v47 = vperm.slane %v50_v38, 0  ;;  %v74_v49 = vmul.f32 %v58_v40, %v23_v7  ;;  %v54_v50 = vperm.slane %v28_v41, 0  ;;  %v94_v51 = vperm.slane %v37_v42, 0 }
   0xb   :  { %86 = vrot.lane.b32.xlu2 %v239_v5, %s186_s19  ;;  %v53_v52 = vperm.slane %v27_v43, 0  ;;  %v46_v55 = vrot.slane %v274_v12, 2  ;;  %v93_v56 = vperm.slane %v36_v44, 0  ;;  %v45_v59 = vrot.slane %v274_v12, 1 }
   0xc   :  { %v30_v60 = vrot.slane %v264_v10, 4  ;;  %v39_v61 = vrot.slane %v269_v11, 4  ;;  %v31_v62 = vrot.slane %v264_v10, 5  ;;  %v33_v32 = vrot.slane %v264_v10, 7 }
   0xe   :  { %v56_v18 = vperm.slane %v30_v60, 0 }
  0x12   :  { %90 = vrot.lane.b32.xlu1 %v246_v6, %s186_s19  ;;  %88 = vrot.lane.b32.xlu0 %v23_v7, %s186_s19 }
  0x13   :  { %124 = vrot.lane.b32.xlu2 %v17_v1, %s187_s6  ;;  %v40_v1 = vrot.slane %v269_v11, 5 }
  0x1a   :  { %128 = vrot.lane.b32.xlu1 %v216_v0, %s187_s6  ;;  %126 = vrot.lane.b32.xlu0 %v234_v4, %s187_s6 }
  0x1b   :  { %130 = vrot.lane.b32.xlu2 %v20_v3, %s187_s6  ;;  %v70_v3 = vmul.f32 %v54_v50, %v216_v0  ;;  %v48_v0 = vrot.slane %v274_v12, 4 }
  0x1d   :  { %v144_v37 = vperm.slane %v48_v0, 0 }
  0x22   :  { %134 = vrot.lane.b32.xlu1 %v239_v5, %s187_s6  ;;  %132 = vrot.lane.b32.xlu0 %v225_v2, %s187_s6 }
  0x23   :  { %136 = vrot.lane.b32.xlu2 %v23_v7, %s187_s6  ;;  %v69_v7 = vmul.f32 %v53_v52, %v234_v4 }
  0x2a   :  { %138 = vrot.lane.b32.xlu0 %v246_v6, %s187_s6 }
  0x5d   :  { %v257_v8 = vpop.permute.xlu2 %84 }
  0x65   :  { %v259_v9 = vpop.permute.xlu2 %86 }
  0x6d   :  { %v125_v13 = vpop.permute.xlu2 %124 }
  0x6e   :  { %v156_v22 = vmul.f32 %v140_v16, %v125_v13  ;;  %v142_v13 = vperm.slane %v46_v55, 0 }
  0x74   :  { %v81_v19 = vpop.permute.xlu1 %80  ;;  %v77_v20 = vpop.permute.xlu0 %76 }
  0x75   :  { %v108_v21 = vmul.f32 %v92_v15, %v77_v20  ;;  %v131_v27 = vpop.permute.xlu2 %130  ;;  %v110_v14 = vmul.f32 %v94_v51, %v81_v19  ;;  %v96_v20 = vperm.slane %v39_v61, 0 }
  0x76   :  { %v159_v36 = vmul.f32 %v143_v30, %v131_v27  ;;  %v72_v30 = vmul.f32 %v56_v18, %v225_v2 }
  0x77   :  { %v116_v25 = vadd.f32 %v108_v21, %v68_v17  ;;  %v141_v17 = vperm.slane %v45_v59, 0  ;;  %v57_v21 = vperm.slane %v31_v62, 0  ;;  %v118_v4 = vadd.f32 %v110_v14, %v70_v3 }
  0x79   :  { %v164_v28 = vadd.f32 %v156_v22, %v116_v25  ;;  %v97_v22 = vperm.slane %v40_v1, 0  ;;  %v49_v25 = vrot.slane %v274_v12, 5 }
  0x7b   :  { %172 = vst [vmem:[%s335_s4] sm:$0x3] %v164_v28 }
  0x7c   :  { %v83_v33 = vpop.permute.xlu1 %82  ;;  %v79_v34 = vpop.permute.xlu0 %78 }
  0x7d   :  { %v111_v35 = vmul.f32 %v95_v29, %v83_v33  ;;  %v137_v48 = vpop.permute.xlu2 %136  ;;  %v109_v15 = vmul.f32 %v93_v56, %v79_v34  ;;  %v42_v33 = vrot.slane %v269_v11, 7  ;;  %v73_v34 = vmul.f32 %v57_v21, %v239_v5 }
  0x7e   :  { %v162_v58 = vmul.f32 %v146_v47, %v137_v48 }
  0x7f   :  { %v119_v39 = vadd.f32 %v111_v35, %v71_v31  ;;  %v117_v26 = vadd.f32 %v109_v15, %v69_v7  ;;  %v112_v31 = vmul.f32 %v96_v20, %v257_v8  ;;  %v113_v35 = vmul.f32 %v97_v22, %v259_v9 }
  0x80   :  { %v59_v8 = vperm.slane %v33_v32, 0  ;;  %v99_v38 = vperm.slane %v42_v33, 0  ;;  %v51_v9 = vrot.slane %v274_v12, 7 }
  0x81   :  { %v167_v45 = vadd.f32 %v159_v36, %v119_v39  ;;  %v145_v36 = vperm.slane %v49_v25, 0  ;;  %v120_v2 = vadd.f32 %v112_v31, %v72_v30  ;;  %v121_v11 = vadd.f32 %v113_v35, %v73_v34 }
  0x82   :  { %v75_v43 = vmul.f32 %v59_v8, %v246_v6 }
  0x83   :  { %175 = vst [vmem:[%s335_s4 + $0x6] sm:$0x3] %v167_v45  ;;  %v147_v45 = vperm.slane %v51_v9, 0 }
  0x84   :  { %v91_v53 = vpop.permute.xlu1 %90  ;;  %v89_v54 = vpop.permute.xlu0 %88 }
  0x85   :  { %v114_v57 = vmul.f32 %v98_v46, %v89_v54  ;;  %v115_v44 = vmul.f32 %v99_v38, %v91_v53 }
  0x87   :  { %v122_v63 = vadd.f32 %v114_v57, %v74_v49  ;;  %v123_v47 = vadd.f32 %v115_v44, %v75_v43 }
  0x89   :  { %v170_v16 = vadd.f32 %v162_v58, %v122_v63 }
  0x8b   :  { %178 = vst [vmem:[%s335_s4 + $0xc] sm:$0x3] %v170_v16 }
  0x8c   :  { %v129_v23 = vpop.permute.xlu1 %128  ;;  %v127_v24 = vpop.permute.xlu0 %126 }
  0x8d   :  { %v158_v19 = vmul.f32 %v142_v13, %v129_v23  ;;  %v157_v27 = vmul.f32 %v141_v17, %v127_v24 }
  0x8f   :  { %v166_v28 = vadd.f32 %v158_v19, %v118_v4  ;;  %v165_v29 = vadd.f32 %v157_v27, %v117_v26 }
  0x91   :  { %174 = vst [vmem:[%s335_s4 + $0x4] sm:$0x3] %v166_v28 }
  0x92   :  { %173 = vst [vmem:[%s335_s4 + $0x2] sm:$0x3] %v165_v29 }
  0x94   :  { %v135_v10 = vpop.permute.xlu1 %134  ;;  %v133_v39 = vpop.permute.xlu0 %132 }
  0x95   :  { %v161_v40 = vmul.f32 %v145_v36, %v135_v10  ;;  %v160_v5 = vmul.f32 %v144_v37, %v133_v39 }
  0x97   :  { %v169_v41 = vadd.f32 %v161_v40, %v121_v11  ;;  %v168_v42 = vadd.f32 %v160_v5, %v120_v2 }
  0x99   :  { %177 = vst [vmem:[%s335_s4 + $0xa] sm:$0x3] %v169_v41 }
  0x9a   :  { %176 = vst [vmem:[%s335_s4 + $0x8] sm:$0x3] %v168_v42 }
  0x9c   :  { %v139_v46 = vpop.permute.xlu0 %138 }
  0x9d   :  { %v163_v48 = vmul.f32 %v147_v45, %v139_v46 }
  0x9f   :  { %v171_v49 = vadd.f32 %v163_v48, %v123_v47 }
  0xa1   :  { %179 = vst [vmem:[%s335_s4 + $0xe] sm:$0x3] %v171_v49 }

</bundles_post_ra>
